<compile_context>
chip_gen: v6e
topology: v6e:2x2x1
jax: 0.10.0
libtpu: 0.0.40
codegen_flags: <defaults>
</compile_context>

<pallas_src>
import jax
import jax.numpy as jnp
from jax.experimental import pallas as pl
from jax.experimental.pallas import tpu as pltpu

_LANE_COLS_DEFAULT = 512          # fallback lane-dense width (multiple of 128)
_TILE_ELEMS = 512 * 1024          # ~2 MiB per f32 buffer
_MIN_BLOCKS = 4                   # give v7x's 2 TCs >= 2 blocks each
_SMALL_THRESHOLD = 1 << 16        # below this, plain XLA sigmoid is faster


def _sigmoid_kernel(x_ref, o_ref):
    x = x_ref[...]
    # sigmoid(x) = 0.5 * tanh(0.5 * x) + 0.5
    # tanh lowers to the EUP (its own bundle slot); only mul+add hit the VPU.
    y = 0.5 * jnp.tanh(0.5 * x) + 0.5
    o_ref[...] = y.astype(o_ref.dtype)


def _sublane_align(dtype):
    # (sublane, 128) packed-tile rule: 8 rows for 32-bit, 16 for 16-bit,
    # 32 for 8-bit dtypes.
    itemsize = jnp.dtype(dtype).itemsize
    return max(8, 32 // max(1, itemsize))


def net_forward(x):
    """Equivalent of Net.forward: sigmoid(x). Accepts any shape (e.g. NCHW)."""
    orig_shape = x.shape
    dtype = x.dtype
    total = x.size

    # Tiny inputs: kernel launch + layout plumbing dominates; use XLA directly.
    if total < _SMALL_THRESHOLD:
        return jax.nn.sigmoid(x)

    sub = _sublane_align(dtype)

    # Lane-dense cols: reuse the trailing dim when it is already a multiple of
    # 128 (no pad, free reshape), otherwise flatten to 512-wide.
    if len(orig_shape) >= 1 and orig_shape[-1] % 128 == 0 and orig_shape[-1] <= 2048:
        cols = orig_shape[-1]
    else:
        cols = _LANE_COLS_DEFAULT

    rows = pl.cdiv(total, cols)
    rows = ((rows + sub - 1) // sub) * sub            # sublane-align only
    padded = rows * cols
    needs_pad = padded != total

    if needs_pad:
        flat = jnp.pad(x.reshape(-1), (0, padded - total))
        x2d = flat.reshape(rows, cols)
    else:
        x2d = x.reshape(rows, cols)

    # Tile size: ~2 MiB per buffer, sublane-aligned, and small enough that the
    # grid has >= _MIN_BLOCKS steps (megacore sharding on v7x) when possible.
    max_block_rows = max(sub, (_TILE_ELEMS // cols) // sub * sub)
    block_rows = min(max_block_rows, rows)
    if pl.cdiv(rows, block_rows) < _MIN_BLOCKS:
        target = ((pl.cdiv(rows, _MIN_BLOCKS) + sub - 1) // sub) * sub
        block_rows = max(sub, min(block_rows, target))

    grid = (pl.cdiv(rows, block_rows),)               # ragged tail is masked

    itemsize = jnp.dtype(dtype).itemsize
    out2d = pl.pallas_call(
        _sigmoid_kernel,
        out_shape=jax.ShapeDtypeStruct((rows, cols), dtype),
        grid=grid,
        in_specs=[pl.BlockSpec((block_rows, cols), lambda i: (i, 0))],
        out_specs=pl.BlockSpec((block_rows, cols), lambda i: (i, 0)),
        compiler_params=pltpu.CompilerParams(
            dimension_semantics=("parallel",),
            vmem_limit_bytes=32 << 20,
        ),
        cost_estimate=pl.CostEstimate(
            flops=3 * rows * cols,
            transcendentals=rows * cols,
            bytes_accessed=2 * rows * cols * itemsize,
        ),
    )(x2d)

    if needs_pad:
        return out2d.reshape(-1)[:total].reshape(orig_shape)
    return out2d.reshape(orig_shape)


if __name__ == "__main__":
    key = jax.random.PRNGKey(0)

    # Primary test: mirrors `torch.reshape(input, (-1, 1, 2, 2))`
    # -> batch=2, channels=1, 2x2 spatial (tiny -> fast path).
    x_small = jax.random.normal(key, (2, 1, 2, 2), dtype=jnp.float32)
    out_small = net_forward(x_small)
    jax.block_until_ready(out_small)
    assert out_small.shape == x_small.shape
    assert jnp.allclose(out_small, jax.nn.sigmoid(x_small), atol=1e-5), \
        "mismatch vs reference sigmoid (small input)"

    # Kernel path, no padding: last dim 512 is lane-dense, rows=768,
    # ragged-free grid of 4 blocks.
    x_big = jax.random.normal(jax.random.PRNGKey(0), (4, 3, 64, 512),
                              dtype=jnp.float32) * 10.0
    out_big = net_forward(x_big)
    jax.block_until_ready(out_big)
    assert out_big.shape == x_big.shape
    assert jnp.allclose(out_big, jax.nn.sigmoid(x_big), atol=1e-5), \
        "mismatch vs reference sigmoid (large, no-pad path)"

    # Kernel path exercising the padded + ragged-tail-block branch.
    x_odd = jax.random.normal(jax.random.PRNGKey(0), (2, 3, 97, 130),
                              dtype=jnp.float32) * 5.0
    out_odd = net_forward(x_odd)
    jax.block_until_ready(out_odd)
    assert out_odd.shape == x_odd.shape
    assert jnp.allclose(out_odd, jax.nn.sigmoid(x_odd), atol=1e-5), \
        "mismatch vs reference sigmoid (padded / ragged path)"

    print("KERNEL_OK")
</pallas_src>

<mosaic_0001>
module attributes {stable_mosaic.version = 11 : i64} {
  func.func @_sigmoid_kernel(%arg0: i32, %arg1: memref<192x512xf32, #tpu.memory_space<vmem>>, %arg2: memref<192x512xf32, #tpu.memory_space<vmem>>) attributes {dimension_semantics = [#tpu.dimension_semantics<parallel>], iteration_bounds = array<i64: 4>, scalar_prefetch = 0 : i64, scratch_operands = 0 : i64, tpu.core_type = #tpu.core_type<tc>, window_params = [{transform_indices = @transform_0, window_bounds = array<i64: 192, 512>}, {transform_indices = @transform_1, window_bounds = array<i64: 192, 512>}]} {
    %c0 = arith.constant 0 : index
    %c0_0 = arith.constant 0 : index
    %0 = vector.load %arg1[%c0, %c0_0] : memref<192x512xf32, #tpu.memory_space<vmem>>, vector<192x512xf32>
    %cst = arith.constant 5.000000e-01 : f32
    %1 = vector.broadcast %cst : f32 to vector<192x512xf32>
    %2 = arith.mulf %1, %0 : vector<192x512xf32>
    %3 = math.tanh %2 : vector<192x512xf32>
    %cst_1 = arith.constant 5.000000e-01 : f32
    %4 = vector.broadcast %cst_1 : f32 to vector<192x512xf32>
    %5 = arith.mulf %4, %3 : vector<192x512xf32>
    %cst_2 = arith.constant 5.000000e-01 : f32
    %6 = vector.broadcast %cst_2 : f32 to vector<192x512xf32>
    %7 = arith.addf %5, %6 : vector<192x512xf32>
    %c0_3 = arith.constant 0 : index
    %c0_4 = arith.constant 0 : index
    %8 = vector.load %arg2[%c0_3, %c0_4] : memref<192x512xf32, #tpu.memory_space<vmem>>, vector<192x512xf32>
    tpu.vector_store %arg2[%c0_3, %c0_4], %7 {strides = array<i32>} : memref<192x512xf32, #tpu.memory_space<vmem>>, vector<192x512xf32>,
    return
  }
  func.func @transform_0(%arg0: i32) -> (i32, i32) {
    %c0_i32 = arith.constant 0 : i32
    %c0_i32_0 = arith.constant 0 : i32
    return %arg0, %c0_i32 : i32, i32
  }
  func.func @transform_1(%arg0: i32) -> (i32, i32) {
    %c0_i32 = arith.constant 0 : i32
    %c0_i32_0 = arith.constant 0 : i32
    return %arg0, %c0_i32 : i32, i32
  }
}

</mosaic_0001>

<bundles_post_ra>
// kernel: tpu_custom_call.1
= control target key start
LH: loop header
LB: loop body
LE: loop exit
PB: predicated region body
PF: predicated region fallthrough
CT: control target
= control target key end

     0   :  { %6 = vsyncpa [#allocation3], 0  ;;  %s1519_s0 = inlined_call_operand.hbm [shape: f32[768,512], index: 0, kind: input, shape index: {}]   ;;  %s1520_s1 = inlined_call_operand.hbm [shape: f32[768,512], index: 1, kind: output, shape index: {}]  }
   0x1   :  { %8 = vsyncpa [#allocation3 + $0x1], 0 }
   0x2   :  { %9 = vsyncpa [#allocation4], 0 }
   0x3   :  { %11 = vsyncpa [#allocation4 + $0x1], 0  ;;  %s1172_s6 = smov 0   ;;  %s1174_s7 = smov 0  }
   0x4   :  { %s1176_s8 = smov 0   ;;  %s1178_s9 = smov 0  }
   0x5 LB: > { %s1193_s10 = sadd.s32 4294967295, %s1154_s9   ;;  %s802_s11 = sadd.s32 4294967294, %s1154_s9   ;;  %s1154_s9 = sphi %s1178_s9, %s1533_s9   ;;  %s1150_s8 = sphi %s1176_s8, %s1532_s8   ;;  %s1146_s7 = sphi %s1174_s7, %s1531_s7   ;;  %s1142_s6 = sphi %s1172_s6, %s1530_s6  }
   0x6   : > { %s1197_s12 = sadd.s32 1, %s1154_s9   ;;  %s24_s13 = sadd.s32 1, %s1150_s8 }
   0x7   : > { %s21_s14 = ssub.s32 %s1154_s9, %s1197_s12  ;;  %p31_p0 = scmp.ne.s32.totalorder %s1150_s8, %s1146_s7 }
   0x8   : > { %p22_p1 = scmp.eq.s32.totalorder %s21_s14, 0  ;;  %p32_p2 = scmp.eq.s32.totalorder %s1154_s9, 0 }
   0x9   : > { %p37_p3 = scmp.ne.s32.totalorder %s1146_s7, %s1142_s6  ;;  %p38_p4 = scmp.eq.s32.totalorder %s1193_s10, 0 }
   0xa   : > { %s1209_s15 = scalar_select %p22_p1, %s1150_s8, %s24_s13  }
   0xb   : > { %p33_p5 = por %p32_p2, %p31_p0  ;;  %p1211_p6 = por %p38_p4, %p37_p3 }
   0xc   : > { %p61_p7 = scmp.eq.s32.totalorder %s1193_s10, 3  ;;  %p67_p8 = scmp.eq.s32.totalorder %s802_s11, 3 }
   0xd   : > { %s1523_s16 = scalar_select %p1211_p6, 1, 0 }
   0xe   : > { %p832_p9 = scmp.lt.s32.totalorder %s1154_s9, 4  ;;  %p1217_p10 = por %p61_p7, %p31_p0 }
   0xf   : > { %p1221_p11 = por %p67_p8, %p37_p3  ;;  %s87_s19 = sand.u32 1, %s1150_s8  }
  0x10   : > { %s1524_s17 = scalar_select %p1217_p10, 1, 0 }
  0x11   : > { %s1525_s18 = scalar_select %p1221_p11, 1, 0 }
  0x12   : > { %s816_s20 = smul.u32 12288, %s1154_s9  ;;  %p1232_p12 = pnand %p832_p9, %p33_p5 }
  0x13   : > { %s818_s21 = smul.u32 768, %s87_s19  ;;  %s1238_s28 = scalar_lea.sflag [#allocation3], %s87_s19 }
  0x14   : > { %s1230_s24 = scalar_lea.hbm %s1519_s0, %s816_s20  ;;  %p1064_p0 = pneg %p1232_p12 }
  0x15   : > { %s91_s26 = scalar_lea.vmem [#allocation2], %s818_s21  ;;  %s1062_s29 = scalar_lea.hbm %s1230_s24, 12288 }
  0x16   : > { %s99_s27 = sshll.u32 %s91_s26, 4  ;;  %p1063_p13 = scmp.ne.s32.totalorder %s1230_s24, %s1062_s29  ;;  %s1236_s27 = int_to_ptr.vmem [resolvable:$true] %s99_s27 }
  0x17   : > { %s1067_s3 = scalar_lea.hbm %s1519_s0, 49152  ;;  %p1068_p3 = scmp.lt.s32.totalorder %s1230_s24, %s1519_s0 }
  0x18   : > { %p1065_p1 = pnand %p1064_p0, %p1063_p13  ;;  %p1069_p4 = scmp.lt.s32.totalorder %s1067_s3, %s1062_s29 }
  0x1a   : > { %p1066_p2 = pneg %p1065_p1  ;;  %p1070_p5 = por %p1069_p4, %p1068_p3 }
  0x1c   : > { %p1071_p7 = pnand %p1070_p5, %p1066_p2 }
  0x1e   : > { %1074 = shalt.err (!%p1071_p7)
}
  0x1f   : > { %s1075_s11 = scalar_lea.vmem %s1236_s27, 12288  ;;  %s1156_s13 = smov [#allocation2]  }
  0x20   : > { %p1076_p8 = scmp.ne.s32.totalorder %s1236_s27, %s1075_s11  ;;  %s1080_s14 = sshll.u32 %s1156_s13, 4  ;;  %s1081_s14 = int_to_ptr.vmem [resolvable:$false] %s1080_s14 }
  0x21   : > { %s1082_s19 = scalar_lea.vmem %s1081_s14, 24576  ;;  %p1083_p1 = scmp.lt.s32.totalorder %s1236_s27, %s1081_s14 }
  0x22   : > { %p1078_p9 = pnand %p1076_p8, %p1064_p0  ;;  %p1084_p11 = scmp.lt.s32.totalorder %s1082_s19, %s1075_s11 }
  0x24   : > { %p1079_p13 = pneg %p1078_p9  ;;  %p1085_p10 = por %p1084_p11, %p1083_p1 }
  0x26   : > { %p1086_p6 = pnand %p1085_p10, %p1079_p13 }
  0x28   : > { %1089 = shalt.err (!%p1086_p6)
}
  0x29   : > { %s1157_s20 = smov 512   ;;  %s1158_s21 = smov 32  }
  0x2a   : > { %827 = dma.hbm_to_vmem [thread:$0]  (!%p1232_p12), %s1230_s24, 12288, %s1236_s27, %s1238_s28, %s1157_s20, %s1157_s20, %s1158_s21  }
  0x2b   : > { %p807_p0 = scmp.ge.s32.totalorder %s1154_s9, 1  ;;  %p107_p2 = scmp.lt.s32.totalorder %s1154_s9, 5 }
  0x2d   : > { %p108_p3 = pnand %p807_p0, %p107_p2 }
  0x2e   : > { %s1262_s22 = sand.u32 (!%p108_p3), 1, %s1146_s7   ;;  %p1527_p6 = scmp.ne.s32.totalorder (!%p108_p3), %s1523_s16, 0 }
  0x2f   : > { %111 = sbr.rel (%p108_p3) target bundleno = 183 (0xb7), region = 24  ;;  %s114_s26 = scalar_lea.sflag (!%p108_p3), [#allocation3], %s1262_s22 }
  0x30   : > { %s819_s23 = smul.u32 (!%p108_p3), 768, %s1262_s22 }
  0x32   : > { %s1268_s29 = scalar_lea.vmem (!%p108_p3), [#allocation2], %s819_s23 }
  0x34   : > { %1133 = dma.done.wait (%p1527_p6), %s114_s26, 12288  }
  0x35   : > { %1135 = vsyncadd (%p1527_p6), %s114_s26, 4294955008  ;;  %v138_v0 = vld [vmem:[%s1268_s29] sm:$0xff]  ;;  %v139_v1 = vld [vmem:[%s1268_s29 + $0x8] sm:$0xff]  ;;  %s1301_s16 = scalar_lea.vmem [#allocation5], %s819_s23  ;;  %s817_s24 = smul.u32 12288, %s1193_s10 }
  0x36   : > { %v140_v2 = vld [vmem:[%s1268_s29 + $0x10] sm:$0xff]  ;;  %v234_v3 = vmul.f32 0.5, %v138_v0  ;;  %v235_v4 = vmul.f32 0.5, %v139_v1  ;;  %v141_v6 = vld [vmem:[%s1268_s29 + $0x18] sm:$0xff]  ;;  %v142_v7 = vld [vmem:[%s1268_s29 + $0x20] sm:$0xff]  ;;  %s729_s25 = sshll.u32 %s1301_s16, 4  ;;  %s1469_s25 = int_to_ptr.vmem [resolvable:$true] %s729_s25 }
  0x37   : > { %v236_v5 = vmul.f32 0.5, %v140_v2  ;;  %v143_v8 = vld [vmem:[%s1268_s29 + $0x28] sm:$0xff]  ;;  %v237_v9 = vmul.f32 0.5, %v141_v6  ;;  %v144_v10 = vld [vmem:[%s1268_s29 + $0x30] sm:$0xff]  ;;  %v238_v11 = vmul.f32 0.5, %v142_v7  ;;  %v145_v12 = vld [vmem:[%s1268_s29 + $0x38] sm:$0xff]  ;;  %s1475_s28 = scalar_lea.hbm %s1520_s1, %s817_s24 }
  0x38   : > { %870 = vtanh.f32 %v234_v3  ;;  %v239_v13 = vmul.f32 0.5, %v143_v8  ;;  %v146_v14 = vld [vmem:[%s1268_s29 + $0x40] sm:$0xff]  ;;  %v240_v15 = vmul.f32 0.5, %v144_v10  ;;  %v147_v16 = vld [vmem:[%s1268_s29 + $0x48] sm:$0xff]  ;;  %v241_v17 = vmul.f32 0.5, %v145_v12  ;;  %v148_v18 = vld [vmem:[%s1268_s29 + $0x50] sm:$0xff] }
  0x39   : > { %872 = vtanh.f32 %v235_v4  ;;  %v242_v19 = vmul.f32 0.5, %v146_v14  ;;  %v149_v20 = vld [vmem:[%s1268_s29 + $0x58] sm:$0xff]  ;;  %v243_v21 = vmul.f32 0.5, %v147_v16  ;;  %v150_v22 = vld [vmem:[%s1268_s29 + $0x60] sm:$0xff]  ;;  %v244_v23 = vmul.f32 0.5, %v148_v18  ;;  %v151_v24 = vld [vmem:[%s1268_s29 + $0x68] sm:$0xff] }
  0x3a   : > { %874 = vtanh.f32 %v236_v5  ;;  %v245_v25 = vmul.f32 0.5, %v149_v20  ;;  %v152_v26 = vld [vmem:[%s1268_s29 + $0x70] sm:$0xff]  ;;  %v246_v27 = vmul.f32 0.5, %v150_v22  ;;  %v153_v28 = vld [vmem:[%s1268_s29 + $0x78] sm:$0xff]  ;;  %v247_v29 = vmul.f32 0.5, %v151_v24  ;;  %v154_v30 = vld [vmem:[%s1268_s29 + $0x80] sm:$0xff] }
  0x3b   : > { %876 = vtanh.f32 %v237_v9  ;;  %v248_v31 = vmul.f32 0.5, %v152_v26  ;;  %v155_v32 = vld [vmem:[%s1268_s29 + $0x88] sm:$0xff]  ;;  %v249_v33 = vmul.f32 0.5, %v153_v28  ;;  %v156_v34 = vld [vmem:[%s1268_s29 + $0x90] sm:$0xff]  ;;  %v250_v35 = vmul.f32 0.5, %v154_v30  ;;  %v157_v36 = vld [vmem:[%s1268_s29 + $0x98] sm:$0xff] }
  0x3c   : > { %878 = vtanh.f32 %v238_v11  ;;  %v251_v38 = vmul.f32 0.5, %v155_v32  ;;  %v158_v39 = vld [vmem:[%s1268_s29 + $0xa0] sm:$0xff]  ;;  %v252_v42 = vmul.f32 0.5, %v156_v34  ;;  %v159_v43 = vld [vmem:[%s1268_s29 + $0xa8] sm:$0xff]  ;;  %v253_v46 = vmul.f32 0.5, %v157_v36  ;;  %v160_v47 = vld [vmem:[%s1268_s29 + $0xb0] sm:$0xff] }
  0x3d   : > { %880 = vtanh.f32 %v239_v13  ;;  %v254_v51 = vmul.f32 0.5, %v158_v39  ;;  %v161_v52 = vld [vmem:[%s1268_s29 + $0xb8] sm:$0xff]  ;;  %v255_v56 = vmul.f32 0.5, %v159_v43  ;;  %v162_v57 = vld [vmem:[%s1268_s29 + $0xc0] sm:$0xff]  ;;  %v256_v61 = vmul.f32 0.5, %v160_v47  ;;  %v163_v62 = vld [vmem:[%s1268_s29 + $0xc8] sm:$0xff] }
  0x3e   : > { %882 = vtanh.f32 %v240_v15  ;;  %v257_v2 = vmul.f32 0.5, %v161_v52  ;;  %v164_v3 = vld [vmem:[%s1268_s29 + $0xd0] sm:$0xff]  ;;  %v258_v7 = vmul.f32 0.5, %v162_v57  ;;  %v165_v8 = vld [vmem:[%s1268_s29 + $0xd8] sm:$0xff]  ;;  %v259_v12 = vmul.f32 0.5, %v163_v62  ;;  %v166_v13 = vld [vmem:[%s1268_s29 + $0xe0] sm:$0xff] }
  0x3f   : > { %884 = vtanh.f32 %v241_v17  ;;  %v260_v17 = vmul.f32 0.5, %v164_v3  ;;  %v167_v18 = vld [vmem:[%s1268_s29 + $0xe8] sm:$0xff]  ;;  %v261_v22 = vmul.f32 0.5, %v165_v8  ;;  %v169_v28 = vld [vmem:[%s1268_s29 + $0xf8] sm:$0xff]  ;;  %v172_v43 = vld [vmem:[%s1268_s29 + $0x110] sm:$0xff]  ;;  %s715_s30 = scalar_lea.sflag [#allocation4], %s1262_s22 }
  0x40   : > { %886 = vtanh.f32 %v242_v19  ;;  %v263_v32 = vmul.f32 0.5, %v167_v18  ;;  %v268_v57 = vmul.f32 0.5, %v172_v43  ;;  %s1090_s2 = scalar_lea.vmem %s1469_s25, 12288  ;;  %p1528_p11 = scmp.ne.s32.totalorder %s1524_s17, 0 }
  0x41   : > { %888 = vtanh.f32 %v243_v21  ;;  %p1091_p10 = scmp.ne.s32.totalorder %s1469_s25, %s1090_s2  ;;  %s1159_s3 = smov [#allocation5]  }
  0x42   : > { %890 = vtanh.f32 %v244_v23  ;;  %v168_v23 = vld [vmem:[%s1268_s29 + $0xf0] sm:$0xff]  ;;  %s1094_s4 = sshll.u32 %s1159_s3, 4  ;;  %s1095_s4 = int_to_ptr.vmem [resolvable:$false] %s1094_s4 }
  0x43   : > { %892 = vtanh.f32 %v245_v25  ;;  %p1092_p12 = pnand %p1091_p10, %p1528_p11  ;;  %s1096_s5 = scalar_lea.vmem %s1095_s4, 24576 }
  0x44   : > { %894 = vtanh.f32 %v246_v27  ;;  %v262_v27 = vmul.f32 0.5, %v166_v13  ;;  %p1097_p5 = scmp.lt.s32.totalorder %s1469_s25, %s1095_s4  ;;  %p1098_p7 = scmp.lt.s32.totalorder %s1096_s5, %s1090_s2 }
  0x45   : > { %v871_v37 = vpop.eup %870  ;;  %896 = vtanh.f32 %v247_v29  ;;  %p1093_p4 = pneg %p1092_p12 }
  0x46   : > { %v873_v40 = vpop.eup %872  ;;  %v426_v41 = vmul.f32 0.5, %v871_v37  ;;  %898 = vtanh.f32 %v248_v31  ;;  %v264_v37 = vmul.f32 0.5, %v168_v23  ;;  %p1099_p8 = por %p1098_p7, %p1097_p5 }
  0x47   : > { %v875_v44 = vpop.eup %874  ;;  %v427_v45 = vmul.f32 0.5, %v873_v40  ;;  %900 = vtanh.f32 %v249_v33  ;;  %v170_v33 = vld [vmem:[%s1268_s29 + $0x100] sm:$0xff] }
  0x48   : > { %v877_v48 = vpop.eup %876  ;;  %v522_v49 = vadd.f32 0.5, %v426_v41  ;;  %v428_v50 = vmul.f32 0.5, %v875_v44  ;;  %902 = vtanh.f32 %v250_v35  ;;  %v266_v47 = vmul.f32 0.5, %v170_v33  ;;  %p1100_p9 = pnand %p1099_p8, %p1093_p4 }
  0x49   : > { %v879_v53 = vpop.eup %878  ;;  %v523_v54 = vadd.f32 0.5, %v427_v45  ;;  %v429_v55 = vmul.f32 0.5, %v877_v48  ;;  %904 = vtanh.f32 %v251_v38  ;;  %v171_v38 = vld [vmem:[%s1268_s29 + $0x108] sm:$0xff]  ;;  %v173_v48 = vld [vmem:[%s1268_s29 + $0x118] sm:$0xff] }
  0x4a   : > { %v881_v58 = vpop.eup %880  ;;  %618 = vst [vmem:[%s1301_s16] sm:$0xff] %v522_v49  ;;  %v524_v59 = vadd.f32 0.5, %v428_v50  ;;  %v430_v60 = vmul.f32 0.5, %v879_v53  ;;  %906 = vtanh.f32 %v252_v42  ;;  %v265_v42 = vmul.f32 0.5, %v169_v28  ;;  %v174_v53 = vld [vmem:[%s1268_s29 + $0x120] sm:$0xff] }
  0x4b   : > { %v883_v63 = vpop.eup %882  ;;  %619 = vst [vmem:[%s1301_s16 + $0x8] sm:$0xff] %v523_v54  ;;  %v525_v0 = vadd.f32 0.5, %v429_v55  ;;  %v431_v1 = vmul.f32 0.5, %v881_v58  ;;  %908 = vtanh.f32 %v253_v46  ;;  %v267_v52 = vmul.f32 0.5, %v171_v38  ;;  %v175_v58 = vld [vmem:[%s1268_s29 + $0x128] sm:$0xff] }
  0x4c   : > { %v885_v4 = vpop.eup %884  ;;  %620 = vst [vmem:[%s1301_s16 + $0x10] sm:$0xff] %v524_v59  ;;  %v526_v5 = vadd.f32 0.5, %v430_v60  ;;  %v432_v6 = vmul.f32 0.5, %v883_v63  ;;  %910 = vtanh.f32 %v254_v51  ;;  %v269_v62 = vmul.f32 0.5, %v173_v48  ;;  %v176_v63 = vld [vmem:[%s1268_s29 + $0x130] sm:$0xff] }
  0x4d   : > { %v887_v9 = vpop.eup %886  ;;  %621 = vst [vmem:[%s1301_s16 + $0x18] sm:$0xff] %v525_v0  ;;  %v527_v10 = vadd.f32 0.5, %v431_v1  ;;  %v433_v11 = vmul.f32 0.5, %v885_v4  ;;  %912 = vtanh.f32 %v255_v56  ;;  %v270_v3 = vmul.f32 0.5, %v174_v53  ;;  %v177_v4 = vld [vmem:[%s1268_s29 + $0x138] sm:$0xff] }
  0x4e   : > { %v889_v14 = vpop.eup %888  ;;  %622 = vst [vmem:[%s1301_s16 + $0x20] sm:$0xff] %v526_v5  ;;  %v528_v15 = vadd.f32 0.5, %v432_v6  ;;  %v434_v16 = vmul.f32 0.5, %v887_v9  ;;  %914 = vtanh.f32 %v256_v61  ;;  %v271_v8 = vmul.f32 0.5, %v175_v58  ;;  %v178_v9 = vld [vmem:[%s1268_s29 + $0x140] sm:$0xff] }
  0x4f   : > { %v891_v19 = vpop.eup %890  ;;  %623 = vst [vmem:[%s1301_s16 + $0x28] sm:$0xff] %v527_v10  ;;  %v529_v20 = vadd.f32 0.5, %v433_v11  ;;  %v435_v21 = vmul.f32 0.5, %v889_v14  ;;  %916 = vtanh.f32 %v257_v2  ;;  %v272_v13 = vmul.f32 0.5, %v176_v63  ;;  %v179_v14 = vld [vmem:[%s1268_s29 + $0x148] sm:$0xff] }
  0x50   : > { %v893_v24 = vpop.eup %892  ;;  %624 = vst [vmem:[%s1301_s16 + $0x30] sm:$0xff] %v528_v15  ;;  %v530_v25 = vadd.f32 0.5, %v434_v16  ;;  %v436_v26 = vmul.f32 0.5, %v891_v19  ;;  %918 = vtanh.f32 %v258_v7  ;;  %v273_v18 = vmul.f32 0.5, %v177_v4  ;;  %v180_v19 = vld [vmem:[%s1268_s29 + $0x150] sm:$0xff] }
  0x51   : > { %v895_v29 = vpop.eup %894  ;;  %625 = vst [vmem:[%s1301_s16 + $0x38] sm:$0xff] %v529_v20  ;;  %v531_v30 = vadd.f32 0.5, %v435_v21  ;;  %v437_v31 = vmul.f32 0.5, %v893_v24  ;;  %920 = vtanh.f32 %v259_v12  ;;  %v274_v23 = vmul.f32 0.5, %v178_v9  ;;  %v181_v24 = vld [vmem:[%s1268_s29 + $0x158] sm:$0xff] }
  0x52   : > { %v897_v34 = vpop.eup %896  ;;  %626 = vst [vmem:[%s1301_s16 + $0x40] sm:$0xff] %v530_v25  ;;  %v532_v35 = vadd.f32 0.5, %v436_v26  ;;  %v438_v36 = vmul.f32 0.5, %v895_v29  ;;  %922 = vtanh.f32 %v260_v17  ;;  %v275_v28 = vmul.f32 0.5, %v179_v14  ;;  %v182_v29 = vld [vmem:[%s1268_s29 + $0x160] sm:$0xff] }
  0x53   : > { %v899_v39 = vpop.eup %898  ;;  %627 = vst [vmem:[%s1301_s16 + $0x48] sm:$0xff] %v531_v30  ;;  %v533_v40 = vadd.f32 0.5, %v437_v31  ;;  %v439_v41 = vmul.f32 0.5, %v897_v34  ;;  %924 = vtanh.f32 %v261_v22  ;;  %v276_v33 = vmul.f32 0.5, %v180_v19  ;;  %v183_v34 = vld [vmem:[%s1268_s29 + $0x168] sm:$0xff] }
  0x54   : > { %v901_v44 = vpop.eup %900  ;;  %628 = vst [vmem:[%s1301_s16 + $0x50] sm:$0xff] %v532_v35  ;;  %v534_v45 = vadd.f32 0.5, %v438_v36  ;;  %v440_v46 = vmul.f32 0.5, %v899_v39  ;;  %926 = vtanh.f32 %v262_v27  ;;  %v277_v38 = vmul.f32 0.5, %v181_v24  ;;  %v184_v39 = vld [vmem:[%s1268_s29 + $0x170] sm:$0xff] }
  0x55   : > { %v903_v49 = vpop.eup %902  ;;  %629 = vst [vmem:[%s1301_s16 + $0x58] sm:$0xff] %v533_v40  ;;  %v535_v50 = vadd.f32 0.5, %v439_v41  ;;  %v441_v51 = vmul.f32 0.5, %v901_v44  ;;  %928 = vtanh.f32 %v263_v32  ;;  %v278_v43 = vmul.f32 0.5, %v182_v29  ;;  %v185_v44 = vld [vmem:[%s1268_s29 + $0x178] sm:$0xff] }
  0x56   : > { %v905_v54 = vpop.eup %904  ;;  %630 = vst [vmem:[%s1301_s16 + $0x60] sm:$0xff] %v534_v45  ;;  %v536_v55 = vadd.f32 0.5, %v440_v46  ;;  %v442_v56 = vmul.f32 0.5, %v903_v49  ;;  %930 = vtanh.f32 %v264_v37  ;;  %v279_v48 = vmul.f32 0.5, %v183_v34  ;;  %v186_v49 = vld [vmem:[%s1268_s29 + $0x180] sm:$0xff] }
  0x57   : > { %v907_v59 = vpop.eup %906  ;;  %631 = vst [vmem:[%s1301_s16 + $0x68] sm:$0xff] %v535_v50  ;;  %v537_v60 = vadd.f32 0.5, %v441_v51  ;;  %v443_v61 = vmul.f32 0.5, %v905_v54  ;;  %932 = vtanh.f32 %v265_v42  ;;  %v280_v53 = vmul.f32 0.5, %v184_v39  ;;  %v187_v54 = vld [vmem:[%s1268_s29 + $0x188] sm:$0xff] }
  0x58   : > { %v909_v0 = vpop.eup %908  ;;  %632 = vst [vmem:[%s1301_s16 + $0x70] sm:$0xff] %v536_v55  ;;  %v538_v1 = vadd.f32 0.5, %v442_v56  ;;  %v444_v2 = vmul.f32 0.5, %v907_v59  ;;  %934 = vtanh.f32 %v266_v47  ;;  %v281_v58 = vmul.f32 0.5, %v185_v44  ;;  %v188_v59 = vld [vmem:[%s1268_s29 + $0x190] sm:$0xff] }
  0x59   : > { %v911_v5 = vpop.eup %910  ;;  %633 = vst [vmem:[%s1301_s16 + $0x78] sm:$0xff] %v537_v60  ;;  %v539_v6 = vadd.f32 0.5, %v443_v61  ;;  %v445_v7 = vmul.f32 0.5, %v909_v0  ;;  %936 = vtanh.f32 %v267_v52  ;;  %v282_v63 = vmul.f32 0.5, %v186_v49  ;;  %v189_v0 = vld [vmem:[%s1268_s29 + $0x198] sm:$0xff] }
  0x5a   : > { %v913_v10 = vpop.eup %912  ;;  %634 = vst [vmem:[%s1301_s16 + $0x80] sm:$0xff] %v538_v1  ;;  %v540_v11 = vadd.f32 0.5, %v444_v2  ;;  %v446_v12 = vmul.f32 0.5, %v911_v5  ;;  %938 = vtanh.f32 %v268_v57  ;;  %v283_v4 = vmul.f32 0.5, %v187_v54  ;;  %v190_v5 = vld [vmem:[%s1268_s29 + $0x1a0] sm:$0xff] }
  0x5b   : > { %v915_v15 = vpop.eup %914  ;;  %635 = vst [vmem:[%s1301_s16 + $0x88] sm:$0xff] %v539_v6  ;;  %v541_v16 = vadd.f32 0.5, %v445_v7  ;;  %v447_v17 = vmul.f32 0.5, %v913_v10  ;;  %940 = vtanh.f32 %v269_v62  ;;  %v284_v9 = vmul.f32 0.5, %v188_v59  ;;  %v191_v10 = vld [vmem:[%s1268_s29 + $0x1a8] sm:$0xff] }
  0x5c   : > { %v917_v20 = vpop.eup %916  ;;  %636 = vst [vmem:[%s1301_s16 + $0x90] sm:$0xff] %v540_v11  ;;  %v542_v21 = vadd.f32 0.5, %v446_v12  ;;  %v448_v22 = vmul.f32 0.5, %v915_v15  ;;  %942 = vtanh.f32 %v270_v3  ;;  %v285_v14 = vmul.f32 0.5, %v189_v0  ;;  %v192_v15 = vld [vmem:[%s1268_s29 + $0x1b0] sm:$0xff] }
  0x5d   : > { %v919_v25 = vpop.eup %918  ;;  %637 = vst [vmem:[%s1301_s16 + $0x98] sm:$0xff] %v541_v16  ;;  %v543_v26 = vadd.f32 0.5, %v447_v17  ;;  %v449_v27 = vmul.f32 0.5, %v917_v20  ;;  %944 = vtanh.f32 %v271_v8  ;;  %v286_v19 = vmul.f32 0.5, %v190_v5  ;;  %v193_v20 = vld [vmem:[%s1268_s29 + $0x1b8] sm:$0xff] }
  0x5e   : > { %v921_v30 = vpop.eup %920  ;;  %638 = vst [vmem:[%s1301_s16 + $0xa0] sm:$0xff] %v542_v21  ;;  %v544_v31 = vadd.f32 0.5, %v448_v22  ;;  %v450_v32 = vmul.f32 0.5, %v919_v25  ;;  %946 = vtanh.f32 %v272_v13  ;;  %v287_v24 = vmul.f32 0.5, %v191_v10  ;;  %v194_v25 = vld [vmem:[%s1268_s29 + $0x1c0] sm:$0xff] }
  0x5f   : > { %v923_v35 = vpop.eup %922  ;;  %639 = vst [vmem:[%s1301_s16 + $0xa8] sm:$0xff] %v543_v26  ;;  %v545_v36 = vadd.f32 0.5, %v449_v27  ;;  %v451_v37 = vmul.f32 0.5, %v921_v30  ;;  %948 = vtanh.f32 %v273_v18  ;;  %v288_v29 = vmul.f32 0.5, %v192_v15  ;;  %v195_v30 = vld [vmem:[%s1268_s29 + $0x1c8] sm:$0xff] }
  0x60   : > { %v925_v40 = vpop.eup %924  ;;  %640 = vst [vmem:[%s1301_s16 + $0xb0] sm:$0xff] %v544_v31  ;;  %v546_v41 = vadd.f32 0.5, %v450_v32  ;;  %v452_v42 = vmul.f32 0.5, %v923_v35  ;;  %950 = vtanh.f32 %v274_v23  ;;  %v289_v34 = vmul.f32 0.5, %v193_v20  ;;  %v196_v35 = vld [vmem:[%s1268_s29 + $0x1d0] sm:$0xff] }
  0x61   : > { %v927_v45 = vpop.eup %926  ;;  %641 = vst [vmem:[%s1301_s16 + $0xb8] sm:$0xff] %v545_v36  ;;  %v547_v46 = vadd.f32 0.5, %v451_v37  ;;  %v453_v47 = vmul.f32 0.5, %v925_v40  ;;  %952 = vtanh.f32 %v275_v28  ;;  %v290_v39 = vmul.f32 0.5, %v194_v25  ;;  %v197_v40 = vld [vmem:[%s1268_s29 + $0x1d8] sm:$0xff] }
  0x62   : > { %v929_v50 = vpop.eup %928  ;;  %642 = vst [vmem:[%s1301_s16 + $0xc0] sm:$0xff] %v546_v41  ;;  %v548_v51 = vadd.f32 0.5, %v452_v42  ;;  %v454_v52 = vmul.f32 0.5, %v927_v45  ;;  %954 = vtanh.f32 %v276_v33  ;;  %v291_v44 = vmul.f32 0.5, %v195_v30  ;;  %v198_v45 = vld [vmem:[%s1268_s29 + $0x1e0] sm:$0xff] }
  0x63   : > { %v931_v55 = vpop.eup %930  ;;  %643 = vst [vmem:[%s1301_s16 + $0xc8] sm:$0xff] %v547_v46  ;;  %v549_v56 = vadd.f32 0.5, %v453_v47  ;;  %v455_v57 = vmul.f32 0.5, %v929_v50  ;;  %956 = vtanh.f32 %v277_v38  ;;  %v292_v49 = vmul.f32 0.5, %v196_v35  ;;  %v199_v50 = vld [vmem:[%s1268_s29 + $0x1e8] sm:$0xff] }
  0x64   : > { %v933_v60 = vpop.eup %932  ;;  %644 = vst [vmem:[%s1301_s16 + $0xd0] sm:$0xff] %v548_v51  ;;  %v550_v61 = vadd.f32 0.5, %v454_v52  ;;  %v456_v62 = vmul.f32 0.5, %v931_v55  ;;  %958 = vtanh.f32 %v278_v43  ;;  %v293_v54 = vmul.f32 0.5, %v197_v40  ;;  %v200_v55 = vld [vmem:[%s1268_s29 + $0x1f0] sm:$0xff] }
  0x65   : > { %v935_v1 = vpop.eup %934  ;;  %645 = vst [vmem:[%s1301_s16 + $0xd8] sm:$0xff] %v549_v56  ;;  %v551_v2 = vadd.f32 0.5, %v455_v57  ;;  %v457_v3 = vmul.f32 0.5, %v933_v60  ;;  %960 = vtanh.f32 %v279_v48  ;;  %v294_v59 = vmul.f32 0.5, %v198_v45  ;;  %v201_v60 = vld [vmem:[%s1268_s29 + $0x1f8] sm:$0xff] }
  0x66   : > { %v937_v6 = vpop.eup %936  ;;  %646 = vst [vmem:[%s1301_s16 + $0xe0] sm:$0xff] %v550_v61  ;;  %v552_v7 = vadd.f32 0.5, %v456_v62  ;;  %v458_v8 = vmul.f32 0.5, %v935_v1  ;;  %962 = vtanh.f32 %v280_v53  ;;  %v295_v0 = vmul.f32 0.5, %v199_v50  ;;  %v202_v1 = vld [vmem:[%s1268_s29 + $0x200] sm:$0xff] }
  0x67   : > { %v939_v11 = vpop.eup %938  ;;  %647 = vst [vmem:[%s1301_s16 + $0xe8] sm:$0xff] %v551_v2  ;;  %v553_v12 = vadd.f32 0.5, %v457_v3  ;;  %v459_v13 = vmul.f32 0.5, %v937_v6  ;;  %964 = vtanh.f32 %v281_v58  ;;  %v296_v5 = vmul.f32 0.5, %v200_v55  ;;  %v203_v6 = vld [vmem:[%s1268_s29 + $0x208] sm:$0xff] }
  0x68   : > { %v941_v16 = vpop.eup %940  ;;  %648 = vst [vmem:[%s1301_s16 + $0xf0] sm:$0xff] %v552_v7  ;;  %v554_v17 = vadd.f32 0.5, %v458_v8  ;;  %v460_v18 = vmul.f32 0.5, %v939_v11  ;;  %966 = vtanh.f32 %v282_v63  ;;  %v297_v10 = vmul.f32 0.5, %v201_v60  ;;  %v204_v11 = vld [vmem:[%s1268_s29 + $0x210] sm:$0xff] }
  0x69   : > { %v943_v21 = vpop.eup %942  ;;  %649 = vst [vmem:[%s1301_s16 + $0xf8] sm:$0xff] %v553_v12  ;;  %v555_v22 = vadd.f32 0.5, %v459_v13  ;;  %v461_v23 = vmul.f32 0.5, %v941_v16  ;;  %968 = vtanh.f32 %v283_v4  ;;  %v298_v15 = vmul.f32 0.5, %v202_v1  ;;  %v205_v16 = vld [vmem:[%s1268_s29 + $0x218] sm:$0xff] }
  0x6a   : > { %v945_v26 = vpop.eup %944  ;;  %650 = vst [vmem:[%s1301_s16 + $0x100] sm:$0xff] %v554_v17  ;;  %v556_v27 = vadd.f32 0.5, %v460_v18  ;;  %v462_v28 = vmul.f32 0.5, %v943_v21  ;;  %970 = vtanh.f32 %v284_v9  ;;  %v299_v20 = vmul.f32 0.5, %v203_v6  ;;  %v206_v21 = vld [vmem:[%s1268_s29 + $0x220] sm:$0xff] }
  0x6b   : > { %v947_v31 = vpop.eup %946  ;;  %651 = vst [vmem:[%s1301_s16 + $0x108] sm:$0xff] %v555_v22  ;;  %v557_v32 = vadd.f32 0.5, %v461_v23  ;;  %v463_v33 = vmul.f32 0.5, %v945_v26  ;;  %972 = vtanh.f32 %v285_v14  ;;  %v300_v25 = vmul.f32 0.5, %v204_v11  ;;  %v207_v26 = vld [vmem:[%s1268_s29 + $0x228] sm:$0xff] }
  0x6c   : > { %v949_v36 = vpop.eup %948  ;;  %652 = vst [vmem:[%s1301_s16 + $0x110] sm:$0xff] %v556_v27  ;;  %v558_v37 = vadd.f32 0.5, %v462_v28  ;;  %v464_v38 = vmul.f32 0.5, %v947_v31  ;;  %974 = vtanh.f32 %v286_v19  ;;  %v301_v30 = vmul.f32 0.5, %v205_v16  ;;  %v208_v31 = vld [vmem:[%s1268_s29 + $0x230] sm:$0xff] }
  0x6d   : > { %v951_v41 = vpop.eup %950  ;;  %653 = vst [vmem:[%s1301_s16 + $0x118] sm:$0xff] %v557_v32  ;;  %v559_v42 = vadd.f32 0.5, %v463_v33  ;;  %v465_v43 = vmul.f32 0.5, %v949_v36  ;;  %976 = vtanh.f32 %v287_v24  ;;  %v302_v35 = vmul.f32 0.5, %v206_v21  ;;  %v209_v36 = vld [vmem:[%s1268_s29 + $0x238] sm:$0xff] }
  0x6e   : > { %v953_v46 = vpop.eup %952  ;;  %654 = vst [vmem:[%s1301_s16 + $0x120] sm:$0xff] %v558_v37  ;;  %v560_v47 = vadd.f32 0.5, %v464_v38  ;;  %v466_v48 = vmul.f32 0.5, %v951_v41  ;;  %978 = vtanh.f32 %v288_v29  ;;  %v303_v40 = vmul.f32 0.5, %v207_v26  ;;  %v210_v41 = vld [vmem:[%s1268_s29 + $0x240] sm:$0xff] }
  0x6f   : > { %v955_v51 = vpop.eup %954  ;;  %655 = vst [vmem:[%s1301_s16 + $0x128] sm:$0xff] %v559_v42  ;;  %v561_v52 = vadd.f32 0.5, %v465_v43  ;;  %v467_v53 = vmul.f32 0.5, %v953_v46  ;;  %980 = vtanh.f32 %v289_v34  ;;  %v304_v45 = vmul.f32 0.5, %v208_v31  ;;  %v211_v46 = vld [vmem:[%s1268_s29 + $0x248] sm:$0xff] }
  0x70   : > { %v957_v56 = vpop.eup %956  ;;  %656 = vst [vmem:[%s1301_s16 + $0x130] sm:$0xff] %v560_v47  ;;  %v562_v57 = vadd.f32 0.5, %v466_v48  ;;  %v468_v58 = vmul.f32 0.5, %v955_v51  ;;  %982 = vtanh.f32 %v290_v39  ;;  %v305_v50 = vmul.f32 0.5, %v209_v36  ;;  %v212_v51 = vld [vmem:[%s1268_s29 + $0x250] sm:$0xff] }
  0x71   : > { %v959_v61 = vpop.eup %958  ;;  %657 = vst [vmem:[%s1301_s16 + $0x138] sm:$0xff] %v561_v52  ;;  %v563_v62 = vadd.f32 0.5, %v467_v53  ;;  %v469_v63 = vmul.f32 0.5, %v957_v56  ;;  %984 = vtanh.f32 %v291_v44  ;;  %v306_v55 = vmul.f32 0.5, %v210_v41  ;;  %v213_v56 = vld [vmem:[%s1268_s29 + $0x258] sm:$0xff] }
  0x72   : > { %v961_v2 = vpop.eup %960  ;;  %658 = vst [vmem:[%s1301_s16 + $0x140] sm:$0xff] %v562_v57  ;;  %v564_v3 = vadd.f32 0.5, %v468_v58  ;;  %v470_v4 = vmul.f32 0.5, %v959_v61  ;;  %986 = vtanh.f32 %v292_v49  ;;  %v307_v60 = vmul.f32 0.5, %v211_v46  ;;  %v214_v61 = vld [vmem:[%s1268_s29 + $0x260] sm:$0xff] }
  0x73   : > { %v963_v7 = vpop.eup %962  ;;  %659 = vst [vmem:[%s1301_s16 + $0x148] sm:$0xff] %v563_v62  ;;  %v565_v8 = vadd.f32 0.5, %v469_v63  ;;  %v471_v9 = vmul.f32 0.5, %v961_v2  ;;  %988 = vtanh.f32 %v293_v54  ;;  %v308_v1 = vmul.f32 0.5, %v212_v51  ;;  %v215_v2 = vld [vmem:[%s1268_s29 + $0x268] sm:$0xff] }
  0x74   : > { %v965_v12 = vpop.eup %964  ;;  %660 = vst [vmem:[%s1301_s16 + $0x150] sm:$0xff] %v564_v3  ;;  %v566_v13 = vadd.f32 0.5, %v470_v4  ;;  %v472_v14 = vmul.f32 0.5, %v963_v7  ;;  %990 = vtanh.f32 %v294_v59  ;;  %v309_v6 = vmul.f32 0.5, %v213_v56  ;;  %v216_v7 = vld [vmem:[%s1268_s29 + $0x270] sm:$0xff] }
  0x75   : > { %v967_v17 = vpop.eup %966  ;;  %661 = vst [vmem:[%s1301_s16 + $0x158] sm:$0xff] %v565_v8  ;;  %v567_v18 = vadd.f32 0.5, %v471_v9  ;;  %v473_v19 = vmul.f32 0.5, %v965_v12  ;;  %992 = vtanh.f32 %v295_v0  ;;  %v310_v11 = vmul.f32 0.5, %v214_v61  ;;  %v217_v12 = vld [vmem:[%s1268_s29 + $0x278] sm:$0xff] }
  0x76   : > { %v969_v22 = vpop.eup %968  ;;  %662 = vst [vmem:[%s1301_s16 + $0x160] sm:$0xff] %v566_v13  ;;  %v568_v23 = vadd.f32 0.5, %v472_v14  ;;  %v474_v24 = vmul.f32 0.5, %v967_v17  ;;  %994 = vtanh.f32 %v296_v5  ;;  %v311_v16 = vmul.f32 0.5, %v215_v2  ;;  %v218_v17 = vld [vmem:[%s1268_s29 + $0x280] sm:$0xff] }
  0x77   : > { %v971_v27 = vpop.eup %970  ;;  %663 = vst [vmem:[%s1301_s16 + $0x168] sm:$0xff] %v567_v18  ;;  %v569_v28 = vadd.f32 0.5, %v473_v19  ;;  %v475_v29 = vmul.f32 0.5, %v969_v22  ;;  %996 = vtanh.f32 %v297_v10  ;;  %v312_v21 = vmul.f32 0.5, %v216_v7  ;;  %v219_v22 = vld [vmem:[%s1268_s29 + $0x288] sm:$0xff] }
  0x78   : > { %v973_v32 = vpop.eup %972  ;;  %664 = vst [vmem:[%s1301_s16 + $0x170] sm:$0xff] %v568_v23  ;;  %v570_v33 = vadd.f32 0.5, %v474_v24  ;;  %v476_v34 = vmul.f32 0.5, %v971_v27  ;;  %998 = vtanh.f32 %v298_v15  ;;  %v313_v26 = vmul.f32 0.5, %v217_v12  ;;  %v220_v27 = vld [vmem:[%s1268_s29 + $0x290] sm:$0xff] }
  0x79   : > { %v975_v37 = vpop.eup %974  ;;  %665 = vst [vmem:[%s1301_s16 + $0x178] sm:$0xff] %v569_v28  ;;  %v571_v38 = vadd.f32 0.5, %v475_v29  ;;  %v477_v39 = vmul.f32 0.5, %v973_v32  ;;  %1000 = vtanh.f32 %v299_v20  ;;  %v314_v31 = vmul.f32 0.5, %v218_v17  ;;  %v221_v32 = vld [vmem:[%s1268_s29 + $0x298] sm:$0xff] }
  0x7a   : > { %v977_v42 = vpop.eup %976  ;;  %666 = vst [vmem:[%s1301_s16 + $0x180] sm:$0xff] %v570_v33  ;;  %v572_v43 = vadd.f32 0.5, %v476_v34  ;;  %v478_v44 = vmul.f32 0.5, %v975_v37  ;;  %1002 = vtanh.f32 %v300_v25  ;;  %v315_v36 = vmul.f32 0.5, %v219_v22  ;;  %v222_v37 = vld [vmem:[%s1268_s29 + $0x2a0] sm:$0xff] }
  0x7b   : > { %v979_v47 = vpop.eup %978  ;;  %667 = vst [vmem:[%s1301_s16 + $0x188] sm:$0xff] %v571_v38  ;;  %v573_v48 = vadd.f32 0.5, %v477_v39  ;;  %v479_v49 = vmul.f32 0.5, %v977_v42  ;;  %1004 = vtanh.f32 %v301_v30  ;;  %v316_v41 = vmul.f32 0.5, %v220_v27  ;;  %v223_v42 = vld [vmem:[%s1268_s29 + $0x2a8] sm:$0xff] }
  0x7c   : > { %v981_v52 = vpop.eup %980  ;;  %668 = vst [vmem:[%s1301_s16 + $0x190] sm:$0xff] %v572_v43  ;;  %v574_v53 = vadd.f32 0.5, %v478_v44  ;;  %v480_v54 = vmul.f32 0.5, %v979_v47  ;;  %1006 = vtanh.f32 %v302_v35  ;;  %v317_v46 = vmul.f32 0.5, %v221_v32  ;;  %v224_v47 = vld [vmem:[%s1268_s29 + $0x2b0] sm:$0xff] }
  0x7d   : > { %v983_v57 = vpop.eup %982  ;;  %669 = vst [vmem:[%s1301_s16 + $0x198] sm:$0xff] %v573_v48  ;;  %v575_v58 = vadd.f32 0.5, %v479_v49  ;;  %v481_v59 = vmul.f32 0.5, %v981_v52  ;;  %1008 = vtanh.f32 %v303_v40  ;;  %v318_v51 = vmul.f32 0.5, %v222_v37  ;;  %v225_v52 = vld [vmem:[%s1268_s29 + $0x2b8] sm:$0xff] }
  0x7e   : > { %v985_v62 = vpop.eup %984  ;;  %670 = vst [vmem:[%s1301_s16 + $0x1a0] sm:$0xff] %v574_v53  ;;  %v576_v63 = vadd.f32 0.5, %v480_v54  ;;  %v482_v0 = vmul.f32 0.5, %v983_v57  ;;  %1010 = vtanh.f32 %v304_v45  ;;  %v319_v56 = vmul.f32 0.5, %v223_v42  ;;  %v226_v57 = vld [vmem:[%s1268_s29 + $0x2c0] sm:$0xff] }
  0x7f   : > { %v987_v3 = vpop.eup %986  ;;  %671 = vst [vmem:[%s1301_s16 + $0x1a8] sm:$0xff] %v575_v58  ;;  %v577_v4 = vadd.f32 0.5, %v481_v59  ;;  %v483_v5 = vmul.f32 0.5, %v985_v62  ;;  %1012 = vtanh.f32 %v305_v50  ;;  %v320_v61 = vmul.f32 0.5, %v224_v47  ;;  %v227_v62 = vld [vmem:[%s1268_s29 + $0x2c8] sm:$0xff] }
  0x80   : > { %v989_v8 = vpop.eup %988  ;;  %672 = vst [vmem:[%s1301_s16 + $0x1b0] sm:$0xff] %v576_v63  ;;  %v578_v9 = vadd.f32 0.5, %v482_v0  ;;  %v484_v10 = vmul.f32 0.5, %v987_v3  ;;  %1014 = vtanh.f32 %v306_v55  ;;  %v321_v2 = vmul.f32 0.5, %v225_v52  ;;  %v228_v3 = vld [vmem:[%s1268_s29 + $0x2d0] sm:$0xff] }
  0x81   : > { %v991_v13 = vpop.eup %990  ;;  %673 = vst [vmem:[%s1301_s16 + $0x1b8] sm:$0xff] %v577_v4  ;;  %v579_v14 = vadd.f32 0.5, %v483_v5  ;;  %v485_v15 = vmul.f32 0.5, %v989_v8  ;;  %1016 = vtanh.f32 %v307_v60  ;;  %v322_v7 = vmul.f32 0.5, %v226_v57  ;;  %v229_v8 = vld [vmem:[%s1268_s29 + $0x2d8] sm:$0xff] }
  0x82   : > { %v993_v18 = vpop.eup %992  ;;  %674 = vst [vmem:[%s1301_s16 + $0x1c0] sm:$0xff] %v578_v9  ;;  %v580_v19 = vadd.f32 0.5, %v484_v10  ;;  %v486_v20 = vmul.f32 0.5, %v991_v13  ;;  %1018 = vtanh.f32 %v308_v1  ;;  %v323_v12 = vmul.f32 0.5, %v227_v62  ;;  %v230_v13 = vld [vmem:[%s1268_s29 + $0x2e0] sm:$0xff] }
  0x83   : > { %v995_v23 = vpop.eup %994  ;;  %675 = vst [vmem:[%s1301_s16 + $0x1c8] sm:$0xff] %v579_v14  ;;  %v581_v24 = vadd.f32 0.5, %v485_v15  ;;  %v487_v25 = vmul.f32 0.5, %v993_v18  ;;  %1020 = vtanh.f32 %v309_v6  ;;  %v324_v17 = vmul.f32 0.5, %v228_v3  ;;  %v231_v18 = vld [vmem:[%s1268_s29 + $0x2e8] sm:$0xff] }
  0x84   : > { %v997_v28 = vpop.eup %996  ;;  %676 = vst [vmem:[%s1301_s16 + $0x1d0] sm:$0xff] %v580_v19  ;;  %v582_v29 = vadd.f32 0.5, %v486_v20  ;;  %v488_v30 = vmul.f32 0.5, %v995_v23  ;;  %1022 = vtanh.f32 %v310_v11  ;;  %v325_v22 = vmul.f32 0.5, %v229_v8  ;;  %v232_v23 = vld [vmem:[%s1268_s29 + $0x2f0] sm:$0xff] }
  0x85   : > { %v999_v33 = vpop.eup %998  ;;  %677 = vst [vmem:[%s1301_s16 + $0x1d8] sm:$0xff] %v581_v24  ;;  %v583_v34 = vadd.f32 0.5, %v487_v25  ;;  %v489_v35 = vmul.f32 0.5, %v997_v28  ;;  %1024 = vtanh.f32 %v311_v16  ;;  %v326_v27 = vmul.f32 0.5, %v230_v13  ;;  %v233_v28 = vld [vmem:[%s1268_s29 + $0x2f8] sm:$0xff] }
  0x86   : > { %v1001_v38 = vpop.eup %1000  ;;  %678 = vst [vmem:[%s1301_s16 + $0x1e0] sm:$0xff] %v582_v29  ;;  %v584_v39 = vadd.f32 0.5, %v488_v30  ;;  %v490_v40 = vmul.f32 0.5, %v999_v33  ;;  %1026 = vtanh.f32 %v312_v21  ;;  %v327_v32 = vmul.f32 0.5, %v231_v18 }
  0x87   : > { %v1003_v43 = vpop.eup %1002  ;;  %679 = vst [vmem:[%s1301_s16 + $0x1e8] sm:$0xff] %v583_v34  ;;  %v585_v44 = vadd.f32 0.5, %v489_v35  ;;  %v491_v45 = vmul.f32 0.5, %v1001_v38  ;;  %1028 = vtanh.f32 %v313_v26 }
  0x88   : > { %v1005_v48 = vpop.eup %1004  ;;  %680 = vst [vmem:[%s1301_s16 + $0x1f0] sm:$0xff] %v584_v39  ;;  %v586_v49 = vadd.f32 0.5, %v490_v40  ;;  %v492_v50 = vmul.f32 0.5, %v1003_v43  ;;  %1030 = vtanh.f32 %v314_v31  ;;  %v329_v40 = vmul.f32 0.5, %v233_v28 }
  0x89   : > { %v1007_v53 = vpop.eup %1006  ;;  %681 = vst [vmem:[%s1301_s16 + $0x1f8] sm:$0xff] %v585_v44  ;;  %v587_v54 = vadd.f32 0.5, %v491_v45  ;;  %v493_v55 = vmul.f32 0.5, %v1005_v48  ;;  %1032 = vtanh.f32 %v315_v36  ;;  %v328_v36 = vmul.f32 0.5, %v232_v23 }
  0x8a   : > { %v1009_v58 = vpop.eup %1008  ;;  %682 = vst [vmem:[%s1301_s16 + $0x200] sm:$0xff] %v586_v49  ;;  %v588_v59 = vadd.f32 0.5, %v492_v50  ;;  %v494_v60 = vmul.f32 0.5, %v1007_v53  ;;  %1034 = vtanh.f32 %v316_v41 }
  0x8b   : > { %v1011_v63 = vpop.eup %1010  ;;  %683 = vst [vmem:[%s1301_s16 + $0x208] sm:$0xff] %v587_v54  ;;  %v589_v0 = vadd.f32 0.5, %v493_v55  ;;  %v495_v1 = vmul.f32 0.5, %v1009_v58  ;;  %1036 = vtanh.f32 %v317_v46 }
  0x8c   : > { %v1013_v4 = vpop.eup %1012  ;;  %684 = vst [vmem:[%s1301_s16 + $0x210] sm:$0xff] %v588_v59  ;;  %v590_v5 = vadd.f32 0.5, %v494_v60  ;;  %v496_v6 = vmul.f32 0.5, %v1011_v63  ;;  %1038 = vtanh.f32 %v318_v51 }
  0x8d   : > { %v1015_v9 = vpop.eup %1014  ;;  %685 = vst [vmem:[%s1301_s16 + $0x218] sm:$0xff] %v589_v0  ;;  %v591_v10 = vadd.f32 0.5, %v495_v1  ;;  %v497_v11 = vmul.f32 0.5, %v1013_v4  ;;  %1040 = vtanh.f32 %v319_v56 }
  0x8e   : > { %v1017_v14 = vpop.eup %1016  ;;  %686 = vst [vmem:[%s1301_s16 + $0x220] sm:$0xff] %v590_v5  ;;  %v592_v15 = vadd.f32 0.5, %v496_v6  ;;  %v498_v16 = vmul.f32 0.5, %v1015_v9  ;;  %1042 = vtanh.f32 %v320_v61 }
  0x8f   : > { %v1019_v19 = vpop.eup %1018  ;;  %687 = vst [vmem:[%s1301_s16 + $0x228] sm:$0xff] %v591_v10  ;;  %v593_v20 = vadd.f32 0.5, %v497_v11  ;;  %v499_v21 = vmul.f32 0.5, %v1017_v14  ;;  %1044 = vtanh.f32 %v321_v2 }
  0x90   : > { %v1021_v24 = vpop.eup %1020  ;;  %688 = vst [vmem:[%s1301_s16 + $0x230] sm:$0xff] %v592_v15  ;;  %v594_v25 = vadd.f32 0.5, %v498_v16  ;;  %v500_v26 = vmul.f32 0.5, %v1019_v19  ;;  %1046 = vtanh.f32 %v322_v7 }
  0x91   : > { %v1023_v29 = vpop.eup %1022  ;;  %689 = vst [vmem:[%s1301_s16 + $0x238] sm:$0xff] %v593_v20  ;;  %v595_v30 = vadd.f32 0.5, %v499_v21  ;;  %v501_v31 = vmul.f32 0.5, %v1021_v24  ;;  %1048 = vtanh.f32 %v323_v12 }
  0x92   : > { %v1025_v33 = vpop.eup %1024  ;;  %690 = vst [vmem:[%s1301_s16 + $0x240] sm:$0xff] %v594_v25  ;;  %v596_v34 = vadd.f32 0.5, %v500_v26  ;;  %v502_v35 = vmul.f32 0.5, %v1023_v29  ;;  %1050 = vtanh.f32 %v324_v17 }
  0x93   : > { %v1027_v37 = vpop.eup %1026  ;;  %691 = vst [vmem:[%s1301_s16 + $0x248] sm:$0xff] %v595_v30  ;;  %v597_v38 = vadd.f32 0.5, %v501_v31  ;;  %v503_v39 = vmul.f32 0.5, %v1025_v33  ;;  %1052 = vtanh.f32 %v325_v22 }
  0x94   : > { %v1029_v41 = vpop.eup %1028  ;;  %692 = vst [vmem:[%s1301_s16 + $0x250] sm:$0xff] %v596_v34  ;;  %v598_v42 = vadd.f32 0.5, %v502_v35  ;;  %v504_v43 = vmul.f32 0.5, %v1027_v37  ;;  %1054 = vtanh.f32 %v326_v27 }
  0x95   : > { %v1031_v44 = vpop.eup %1030  ;;  %693 = vst [vmem:[%s1301_s16 + $0x258] sm:$0xff] %v597_v38  ;;  %v599_v45 = vadd.f32 0.5, %v503_v39  ;;  %v505_v46 = vmul.f32 0.5, %v1029_v41  ;;  %1056 = vtanh.f32 %v327_v32 }
  0x96   : > { %v1033_v47 = vpop.eup %1032  ;;  %694 = vst [vmem:[%s1301_s16 + $0x260] sm:$0xff] %v598_v42  ;;  %v600_v48 = vadd.f32 0.5, %v504_v43  ;;  %v506_v49 = vmul.f32 0.5, %v1031_v44  ;;  %1058 = vtanh.f32 %v328_v36 }
  0x97   : > { %v1035_v50 = vpop.eup %1034  ;;  %695 = vst [vmem:[%s1301_s16 + $0x268] sm:$0xff] %v599_v45  ;;  %v601_v51 = vadd.f32 0.5, %v505_v46  ;;  %v507_v52 = vmul.f32 0.5, %v1033_v47  ;;  %1060 = vtanh.f32 %v329_v40 }
  0x98   : > { %v1037_v53 = vpop.eup %1036  ;;  %696 = vst [vmem:[%s1301_s16 + $0x270] sm:$0xff] %v600_v48  ;;  %v602_v54 = vadd.f32 0.5, %v506_v49  ;;  %v508_v55 = vmul.f32 0.5, %v1035_v50 }
  0x99   : > { %v1039_v56 = vpop.eup %1038  ;;  %697 = vst [vmem:[%s1301_s16 + $0x278] sm:$0xff] %v601_v51  ;;  %v603_v57 = vadd.f32 0.5, %v507_v52  ;;  %v509_v58 = vmul.f32 0.5, %v1037_v53 }
  0x9a   : > { %v1041_v59 = vpop.eup %1040  ;;  %698 = vst [vmem:[%s1301_s16 + $0x280] sm:$0xff] %v602_v54  ;;  %v604_v60 = vadd.f32 0.5, %v508_v55  ;;  %v510_v61 = vmul.f32 0.5, %v1039_v56 }
  0x9b   : > { %v1043_v62 = vpop.eup %1042  ;;  %699 = vst [vmem:[%s1301_s16 + $0x288] sm:$0xff] %v603_v57  ;;  %v605_v63 = vadd.f32 0.5, %v509_v58  ;;  %v511_v0 = vmul.f32 0.5, %v1041_v59 }
  0x9c   : > { %v1045_v1 = vpop.eup %1044  ;;  %700 = vst [vmem:[%s1301_s16 + $0x290] sm:$0xff] %v604_v60  ;;  %v606_v2 = vadd.f32 0.5, %v510_v61  ;;  %v512_v3 = vmul.f32 0.5, %v1043_v62 }
  0x9d   : > { %v1047_v4 = vpop.eup %1046  ;;  %701 = vst [vmem:[%s1301_s16 + $0x298] sm:$0xff] %v605_v63  ;;  %v607_v5 = vadd.f32 0.5, %v511_v0  ;;  %v513_v6 = vmul.f32 0.5, %v1045_v1 }
  0x9e   : > { %v1049_v7 = vpop.eup %1048  ;;  %702 = vst [vmem:[%s1301_s16 + $0x2a0] sm:$0xff] %v606_v2  ;;  %v608_v8 = vadd.f32 0.5, %v512_v3  ;;  %v514_v9 = vmul.f32 0.5, %v1047_v4 }
  0x9f   : > { %v1051_v10 = vpop.eup %1050  ;;  %703 = vst [vmem:[%s1301_s16 + $0x2a8] sm:$0xff] %v607_v5  ;;  %v609_v11 = vadd.f32 0.5, %v513_v6  ;;  %v515_v12 = vmul.f32 0.5, %v1049_v7 }
  0xa0   : > { %v1053_v13 = vpop.eup %1052  ;;  %704 = vst [vmem:[%s1301_s16 + $0x2b0] sm:$0xff] %v608_v8  ;;  %v610_v14 = vadd.f32 0.5, %v514_v9  ;;  %v516_v15 = vmul.f32 0.5, %v1051_v10 }
  0xa1   : > { %v1055_v16 = vpop.eup %1054  ;;  %705 = vst [vmem:[%s1301_s16 + $0x2b8] sm:$0xff] %v609_v11  ;;  %v611_v17 = vadd.f32 0.5, %v515_v12  ;;  %v517_v18 = vmul.f32 0.5, %v1053_v13 }
  0xa2   : > { %v1057_v19 = vpop.eup %1056  ;;  %706 = vst [vmem:[%s1301_s16 + $0x2c0] sm:$0xff] %v610_v14  ;;  %v612_v20 = vadd.f32 0.5, %v516_v15  ;;  %v518_v21 = vmul.f32 0.5, %v1055_v16 }
  0xa3   : > { %v1059_v22 = vpop.eup %1058  ;;  %707 = vst [vmem:[%s1301_s16 + $0x2c8] sm:$0xff] %v611_v17  ;;  %v613_v23 = vadd.f32 0.5, %v517_v18  ;;  %v519_v24 = vmul.f32 0.5, %v1057_v19 }
  0xa4   : > { %v1061_v25 = vpop.eup %1060  ;;  %708 = vst [vmem:[%s1301_s16 + $0x2d0] sm:$0xff] %v612_v20  ;;  %v614_v26 = vadd.f32 0.5, %v518_v21  ;;  %v520_v27 = vmul.f32 0.5, %v1059_v22 }
  0xa5   : > { %709 = vst [vmem:[%s1301_s16 + $0x2d8] sm:$0xff] %v613_v23  ;;  %v615_v28 = vadd.f32 0.5, %v519_v24  ;;  %v521_v29 = vmul.f32 0.5, %v1061_v25 }
  0xa6   : > { %710 = vst [vmem:[%s1301_s16 + $0x2e0] sm:$0xff] %v614_v26  ;;  %v616_v30 = vadd.f32 0.5, %v520_v27 }
  0xa7   : > { %711 = vst [vmem:[%s1301_s16 + $0x2e8] sm:$0xff] %v615_v28  ;;  %v617_v31 = vadd.f32 0.5, %v521_v29 }
  0xa8   : > { %712 = vst [vmem:[%s1301_s16 + $0x2f0] sm:$0xff] %v616_v30 }
  0xa9   : > { %713 = vst [vmem:[%s1301_s16 + $0x2f8] sm:$0xff] %v617_v31 }
  0xaa   : > { %1103 = shalt.err (!%p1100_p9)
}
  0xab   : > { %s1104_s11 = scalar_lea.hbm %s1475_s28, 12288  ;;  %s1108_s19 = scalar_lea.hbm %s1520_s1, 49152 }
  0xac   : > { %p1105_p13 = scmp.ne.s32.totalorder %s1475_s28, %s1104_s11  ;;  %p1109_p2 = scmp.lt.s32.totalorder %s1475_s28, %s1520_s1 }
  0xad   : > { %p1110_p3 = scmp.lt.s32.totalorder %s1108_s19, %s1104_s11 }
  0xae   : > { %p1106_p1 = pnand %p1105_p13, %p1528_p11 }
  0xaf   : > { %p1111_p6 = por %p1110_p3, %p1109_p2 }
  0xb0   : > { %p1107_p0 = pneg %p1106_p1 }
  0xb2   : > { %p1112_p10 = pnand %p1111_p6, %p1107_p0 }
  0xb4   : > { %1115 = shalt.err (!%p1112_p10)
}
  0xb5   : > { %s1160_s23 = smov 512   ;;  %s1161_s26 = smov 32  }
  0xb6   : > { %822 = dma.vmem_to_hbm [thread:$0]  (%p1528_p11), %s1469_s25, 12288, %s1475_s28, %s715_s30, %s1160_s23, %s1160_s23, %s1161_s26  }
  0xb7 PF: > { %p833_p12 = scmp.ge.s32.totalorder %s1154_s9, 2  ;;  %s744_s29 = sand.u32 1, %s1142_s6  }
  0xb8   : > { %p1529_p4 = scmp.ne.s32.totalorder %s1525_s18, 0  ;;  %s745_s16 = scalar_lea.sflag [#allocation4], %s744_s29 }
  0xba   : > { %p829_p5 = pnand %p833_p12, %p1529_p4 }
  0xbc   : > { %p830_p7 = pneg %p829_p5 }
  0xbe   : > { %1137 = dma.done.wait (%p830_p7), %s745_s16, 12288  }
  0xbf   : > { %1139 = vsyncadd (%p830_p7), %s745_s16, 4294955008  ;;  %p14_p8 = scmp.ge.s32.totalorder %s1197_s12, 6   ;;  %s1530_s6 = smov %s1146_s7 }
  0xc0   : > { %s1531_s7 = smov %s1150_s8  ;;  %s1532_s8 = smov %s1209_s15 }
  0xc1   : > { %s1533_s9 = smov %s1197_s12  ;;  %16 = sbr.rel (!%p14_p8) target bundleno = 5 (0x5), region = 69 }
  0xc6   :  { %750 = vsyncpa [#allocation3], 1 }
  0xc7   :  { %752 = vsyncpa [#allocation3 + $0x1], 1 }
  0xc8   :  { %753 = vsyncpa [#allocation4], 1 }
  0xc9   :  { %755 = vsyncpa [#allocation4 + $0x1], 1 }

</bundles_post_ra>
